<compile_context>
chip_gen: v5e
topology: v5e:2x2
jax: 0.10.0
libtpu: 0.0.40
codegen_flags: <defaults>
</compile_context>

<pallas_src>
import jax
import jax.numpy as jnp
from jax.experimental import pallas as pl
from jax.experimental.pallas import tpu as pltpu


def _timestep_embed_kernel(ts_ref, pe_ref, w1_ref, b1_ref, w2_ref, b2_ref,
                           o_ref, x_ref):
    # ts_ref: (B,) int32 in SMEM; pe_ref: (max_len, D) f32 in VMEM;
    # w*: (D, D) stored (in, out); b*: (1, D); x_ref: (B, D) VMEM scratch.
    B = o_ref.shape[0]
    # In-kernel gather: B dynamic row reads from the VMEM-resident pe table.
    for i in range(B):                                   # B is tiny & static
        x_ref[pl.ds(i, 1), :] = pe_ref[pl.ds(ts_ref[i], 1), :]
    x = x_ref[...]

    h = jnp.dot(x, w1_ref[...],
                preferred_element_type=jnp.float32,
                precision=jax.lax.Precision.HIGHEST) + b1_ref[...]
    h = h * jax.nn.sigmoid(h)                            # SiLU (EUP slot)
    y = jnp.dot(h, w2_ref[...],
                preferred_element_type=jnp.float32,
                precision=jax.lax.Precision.HIGHEST) + b2_ref[...]
    o_ref[...] = y.astype(o_ref.dtype)


def timestep_embedder(timesteps, pe, w1, b1, w2, b2):
    """timesteps: (B,) int32; pe: (max_len, 1, D); w*: (D, D) as (in, out); b*: (1, D)."""
    B = timesteps.shape[0]
    max_len, _, D = pe.shape
    pe2d = pe.reshape(max_len, D)                        # metadata-only reshape

    smem = pl.BlockSpec(memory_space=pltpu.MemorySpace.SMEM)
    vmem = pl.BlockSpec(memory_space=pltpu.MemorySpace.VMEM)

    bytes_accessed = (B * 4                 # timesteps
                      + max_len * D * 4     # pe
                      + 2 * D * D * 4       # w1, w2
                      + 2 * D * 4           # b1, b2
                      + B * D * 4)          # output
    cost = pl.CostEstimate(flops=4 * B * D * D,          # two (B,D)x(D,D) matmuls
                           transcendentals=B * D,        # sigmoid exp
                           bytes_accessed=bytes_accessed)

    y = pl.pallas_call(
        _timestep_embed_kernel,
        out_shape=jax.ShapeDtypeStruct((B, D), pe.dtype),
        in_specs=[smem, vmem, vmem, vmem, vmem, vmem],
        out_specs=vmem,
        scratch_shapes=[pltpu.VMEM((B, D), jnp.float32)],
        cost_estimate=cost,
    )(timesteps, pe2d, w1, b1, w2, b2)
    return y.reshape(B, 1, D)                            # match pe[timesteps] layout


timestep_embedder_jit = jax.jit(timestep_embedder)


def _reference(timesteps, pe, w1, b1, w2, b2):
    x = pe[timesteps]                                    # (B, 1, D)
    h = jnp.dot(x, w1, precision=jax.lax.Precision.HIGHEST) + b1[0]
    h = h * jax.nn.sigmoid(h)
    return jnp.dot(h, w2, precision=jax.lax.Precision.HIGHEST) + b2[0]


if __name__ == "__main__":
    latent_dim = 128     # D (time_embed_dim == latent_dim); multiple of 128 -> lane-dense
    max_len = 64
    batch = 4

    key = jax.random.PRNGKey(0)
    k_pe, k_w1, k_b1, k_w2, k_b2, k_ts = jax.random.split(key, 6)

    # Deterministic synthetic parameters (shapes from the module __init__).
    # Weights stored as (in, out) == torch weight.T so the kernel does x @ W + b.
    pe = jax.random.normal(k_pe, (max_len, 1, latent_dim), dtype=jnp.float32)
    w1 = jax.random.normal(k_w1, (latent_dim, latent_dim), dtype=jnp.float32) * 0.1
    b1 = jax.random.normal(k_b1, (1, latent_dim), dtype=jnp.float32) * 0.1
    w2 = jax.random.normal(k_w2, (latent_dim, latent_dim), dtype=jnp.float32) * 0.1
    b2 = jax.random.normal(k_b2, (1, latent_dim), dtype=jnp.float32) * 0.1

    timesteps = jax.random.randint(k_ts, (batch,), 0, max_len, dtype=jnp.int32)

    out = timestep_embedder_jit(timesteps, pe, w1, b1, w2, b2)
    out = jax.block_until_ready(out)

    ref = _reference(timesteps, pe, w1, b1, w2, b2)
    assert out.shape == (batch, 1, latent_dim)
    assert jnp.allclose(out, ref, atol=1e-4, rtol=1e-4), float(jnp.max(jnp.abs(out - ref)))

    print("KERNEL_OK")
</pallas_src>

<mosaic_0001>
module attributes {stable_mosaic.version = 11 : i64} {
  func.func @_timestep_embed_kernel(%arg0: memref<4xi32, #tpu.memory_space<smem>>, %arg1: memref<64x128xf32, #tpu.memory_space<vmem>>, %arg2: memref<128x128xf32, #tpu.memory_space<vmem>>, %arg3: memref<1x128xf32, #tpu.memory_space<vmem>>, %arg4: memref<128x128xf32, #tpu.memory_space<vmem>>, %arg5: memref<1x128xf32, #tpu.memory_space<vmem>>, %arg6: memref<4x128xf32, #tpu.memory_space<vmem>>, %arg7: memref<4x128xf32, #tpu.memory_space<vmem>>) attributes {dimension_semantics = [], scalar_prefetch = 0 : i64, scratch_operands = 1 : i64, tpu.core_type = #tpu.core_type<tc>} {
    %c0 = arith.constant 0 : index
    %0 = memref.load %arg0[%c0] : memref<4xi32, #tpu.memory_space<smem>>
    %1 = arith.index_cast %0 : i32 to index
    %c0_0 = arith.constant 0 : index
    %2 = vector.load %arg1[%1, %c0_0] : memref<64x128xf32, #tpu.memory_space<vmem>>, vector<1x128xf32>
    %c0_1 = arith.constant 0 : index
    %c0_2 = arith.constant 0 : index
    %3 = vector.load %arg7[%c0_1, %c0_2] : memref<4x128xf32, #tpu.memory_space<vmem>>, vector<1x128xf32>
    tpu.vector_store %arg7[%c0_1, %c0_2], %2 {strides = array<i32>} : memref<4x128xf32, #tpu.memory_space<vmem>>, vector<1x128xf32>,
    %c1 = arith.constant 1 : index
    %4 = memref.load %arg0[%c1] : memref<4xi32, #tpu.memory_space<smem>>
    %5 = arith.index_cast %4 : i32 to index
    %c0_3 = arith.constant 0 : index
    %6 = vector.load %arg1[%5, %c0_3] : memref<64x128xf32, #tpu.memory_space<vmem>>, vector<1x128xf32>
    %c1_4 = arith.constant 1 : index
    %c0_5 = arith.constant 0 : index
    %7 = vector.load %arg7[%c1_4, %c0_5] : memref<4x128xf32, #tpu.memory_space<vmem>>, vector<1x128xf32>
    tpu.vector_store %arg7[%c1_4, %c0_5], %6 {strides = array<i32>} : memref<4x128xf32, #tpu.memory_space<vmem>>, vector<1x128xf32>,
    %c2 = arith.constant 2 : index
    %8 = memref.load %arg0[%c2] : memref<4xi32, #tpu.memory_space<smem>>
    %9 = arith.index_cast %8 : i32 to index
    %c0_6 = arith.constant 0 : index
    %10 = vector.load %arg1[%9, %c0_6] : memref<64x128xf32, #tpu.memory_space<vmem>>, vector<1x128xf32>
    %c2_7 = arith.constant 2 : index
    %c0_8 = arith.constant 0 : index
    %11 = vector.load %arg7[%c2_7, %c0_8] : memref<4x128xf32, #tpu.memory_space<vmem>>, vector<1x128xf32>
    tpu.vector_store %arg7[%c2_7, %c0_8], %10 {strides = array<i32>} : memref<4x128xf32, #tpu.memory_space<vmem>>, vector<1x128xf32>,
    %c3 = arith.constant 3 : index
    %12 = memref.load %arg0[%c3] : memref<4xi32, #tpu.memory_space<smem>>
    %13 = arith.index_cast %12 : i32 to index
    %c0_9 = arith.constant 0 : index
    %14 = vector.load %arg1[%13, %c0_9] : memref<64x128xf32, #tpu.memory_space<vmem>>, vector<1x128xf32>
    %c3_10 = arith.constant 3 : index
    %c0_11 = arith.constant 0 : index
    %15 = vector.load %arg7[%c3_10, %c0_11] : memref<4x128xf32, #tpu.memory_space<vmem>>, vector<1x128xf32>
    tpu.vector_store %arg7[%c3_10, %c0_11], %14 {strides = array<i32>} : memref<4x128xf32, #tpu.memory_space<vmem>>, vector<1x128xf32>,
    %c0_12 = arith.constant 0 : index
    %c0_13 = arith.constant 0 : index
    %16 = vector.load %arg7[%c0_12, %c0_13] : memref<4x128xf32, #tpu.memory_space<vmem>>, vector<4x128xf32>
    %c0_14 = arith.constant 0 : index
    %c0_15 = arith.constant 0 : index
    %17 = vector.load %arg2[%c0_14, %c0_15] : memref<128x128xf32, #tpu.memory_space<vmem>>, vector<128x128xf32>
    %cst = arith.constant dense<0.000000e+00> : vector<4x128xf32>
    %18 = tpu.matmul %16, %17, %cst {dimension_numbers = #tpu.dot_dimension_numbers<[1], [0], [0], [1], [0, 0, 1, 1], [], []>, precision = #tpu.contract_precision<fp32>} : vector<4x128xf32>, vector<128x128xf32>, vector<4x128xf32> -> vector<4x128xf32>
    %c0_16 = arith.constant 0 : index
    %c0_17 = arith.constant 0 : index
    %19 = vector.load %arg3[%c0_16, %c0_17] : memref<1x128xf32, #tpu.memory_space<vmem>>, vector<1x128xf32>
    %20 = vector.broadcast %19 : vector<1x128xf32> to vector<4x128xf32>
    %21 = arith.addf %18, %20 : vector<4x128xf32>
    %22 = arith.negf %21 : vector<4x128xf32>
    %23 = math.exp %22 : vector<4x128xf32>
    %cst_18 = arith.constant 1.000000e+00 : f32
    %24 = vector.broadcast %cst_18 : f32 to vector<4x128xf32>
    %25 = arith.addf %24, %23 : vector<4x128xf32>
    %26 = arith.divf %24, %25 : vector<4x128xf32>
    %27 = arith.mulf %21, %26 : vector<4x128xf32>
    %c0_19 = arith.constant 0 : index
    %c0_20 = arith.constant 0 : index
    %28 = vector.load %arg4[%c0_19, %c0_20] : memref<128x128xf32, #tpu.memory_space<vmem>>, vector<128x128xf32>
    %cst_21 = arith.constant dense<0.000000e+00> : vector<4x128xf32>
    %29 = tpu.matmul %27, %28, %cst_21 {dimension_numbers = #tpu.dot_dimension_numbers<[1], [0], [0], [1], [0, 0, 1, 1], [], []>, precision = #tpu.contract_precision<fp32>} : vector<4x128xf32>, vector<128x128xf32>, vector<4x128xf32> -> vector<4x128xf32>
    %c0_22 = arith.constant 0 : index
    %c0_23 = arith.constant 0 : index
    %30 = vector.load %arg5[%c0_22, %c0_23] : memref<1x128xf32, #tpu.memory_space<vmem>>, vector<1x128xf32>
    %31 = vector.broadcast %30 : vector<1x128xf32> to vector<4x128xf32>
    %32 = arith.addf %29, %31 : vector<4x128xf32>
    %c0_24 = arith.constant 0 : index
    %c0_25 = arith.constant 0 : index
    %33 = vector.load %arg6[%c0_24, %c0_25] : memref<4x128xf32, #tpu.memory_space<vmem>>, vector<4x128xf32>
    tpu.vector_store %arg6[%c0_24, %c0_25], %32 {strides = array<i32>} : memref<4x128xf32, #tpu.memory_space<vmem>>, vector<4x128xf32>,
    return
  }
}

</mosaic_0001>

<bundles_post_ra>
// kernel: timestep_embedder.1
= control target key start
LH: loop header
LB: loop body
LE: loop exit
PB: predicated region body
PF: predicated region fallthrough
CT: control target
= control target key end

     0   :  { %11 = vsyncpa [#allocation6], 0  ;;  %s1539_s0 = inlined_call_operand.hbm [shape: s32[4], index: 0, kind: input, shape index: {}]   ;;  %s1540_s1 = inlined_call_operand.hbm [shape: f32[64,128], index: 1, kind: input, shape index: {}]   ;;  %s1541_s2 = inlined_call_operand.hbm [shape: f32[128,128], index: 2, kind: input, shape index: {}]   ;;  %s1542_s3 = inlined_call_operand.vmem [shape: f32[1,128], index: 3, kind: input, shape index: {}]   ;;  %s1543_s4 = inlined_call_operand.hbm [shape: f32[128,128], index: 4, kind: input, shape index: {}]   ;;  %s1544_s5 = inlined_call_operand.vmem [shape: f32[1,128], index: 5, kind: input, shape index: {}]   ;;  %s1545_s6 = inlined_call_operand.hbm [shape: f32[4,128], index: 6, kind: output, shape index: {}]  }
   0x1   :  { %12 = vsyncpa [#allocation4], 0 }
   0x2   :  { %13 = vsyncpa [#allocation9], 0 }
   0x3   :  { %14 = vsyncpa [#allocation5], 0  ;;  %s41_s23 = sshll.u32 %s1541_s2, 4  ;;  %s1000_s24 = smov [#allocation8]   ;;  %s42_s23 = int_to_ptr.hbm [resolvable:$true] %s41_s23 }
   0x4   :  { %s43_s25 = sshll.u32 %s1000_s24, 4  ;;  %s20_s28 = sshll.u32 %s1539_s0, 4  ;;  %s44_s25 = int_to_ptr.vmem [resolvable:$true] %s43_s25  ;;  %s21_s28 = int_to_ptr.hbm [resolvable:$true] %s20_s28 }
   0x5   :  { %s1001_s29 = smov 128   ;;  %s1002_s30 = smov 8  }
   0x6   :  { %49 = dma.hbm_to_vmem [thread:$0]  %s42_s23, 2048, %s44_s25, [#allocation9], %s1001_s29, %s1001_s29, %s1002_s30  }
   0x7   :  { %s1003_s7 = smov [#allocation3]   ;;  %s28_s10 = sshll.u32 %s1540_s1, 4  ;;  %s29_s10 = int_to_ptr.hbm [resolvable:$true] %s28_s10 }
   0x8   :  { %23 = dma.hbm_to_smem %s21_s28, 16, %s1003_s7, [#allocation6]  }
   0x9   :  { %s1004_s2 = smov [#allocation7]   ;;  %s56_s14 = sshll.u32 %s1543_s4, 4  ;;  %s57_s14 = int_to_ptr.hbm [resolvable:$true] %s56_s14 }
   0xa   :  { %s30_s11 = sshll.u32 %s1004_s2, 4  ;;  %s1005_s0 = smov [#allocation10]   ;;  %s31_s11 = int_to_ptr.vmem [resolvable:$true] %s30_s11 }
   0xb   :  { %36 = dma.hbm_to_vmem [thread:$0]  %s29_s10, 1024, %s31_s11, [#allocation4], %s1001_s29, %s1001_s29, %s1002_s30  }
   0xc   :  { %s58_s15 = sshll.u32 %s1005_s0, 4  ;;  %s59_s15 = int_to_ptr.vmem [resolvable:$true] %s58_s15 }
   0xd   :  { %64 = dma.hbm_to_vmem [thread:$0]  %s57_s14, 2048, %s59_s15, [#allocation9], %s1001_s29, %s1001_s29, %s1002_s30  }
   0xe   :  { %992 = dma.done.wait [#allocation6], 16  }
   0xf   :  { %993 = vsyncadd [#allocation6], 4294967280 }
  0x10   :  { %994 = dma.done.wait [#allocation4], 1024  }
  0x11   :  { %995 = vsyncadd [#allocation4], 4294966272 }
  0x12   :  { %996 = dma.done.wait [#allocation9], 4096  }
  0x13   :  { %997 = vsyncadd [#allocation9], 4294963200 }
  0x14   :  { %83 = sfence }
  0x15   :  { %v116_v0 = vld [vmem:[#allocation8 + $0x78] sm:$0xff]  ;;  %v115_v1 = vld [vmem:[#allocation8 + $0x70] sm:$0xff]  ;;  %v114_v2 = vld [vmem:[#allocation8 + $0x68] sm:$0xff]  ;;  %s1054_s1 = sld [smem:[#allocation3]]  ;;  %s1006_s25 = smov [#allocation11]  }
  0x16   :  { %v1056_v3 = vand.u32 4294901760, %v116_v0  ;;  %v1058_v4 = vand.u32 4294901760, %v115_v1  ;;  %v1060_v5 = vand.u32 4294901760, %v114_v2  ;;  %v113_v6 = vld [vmem:[#allocation8 + $0x60] sm:$0xff]  ;;  %v112_v7 = vld [vmem:[#allocation8 + $0x58] sm:$0xff]  ;;  %v111_v8 = vld [vmem:[#allocation8 + $0x50] sm:$0xff] }
  0x17   :  { %v1062_v9 = vand.u32 4294901760, %v113_v6  ;;  %v1064_v10 = vand.u32 4294901760, %v112_v7  ;;  %v1066_v11 = vand.u32 4294901760, %v111_v8  ;;  %v110_v12 = vld [vmem:[#allocation8 + $0x48] sm:$0xff]  ;;  %v109_v13 = vld [vmem:[#allocation8 + $0x40] sm:$0xff]  ;;  %s1081_s4 = sld [smem:[#allocation3 + $0x1]] }
  0x18   :  { %122 = vmatpush.msra.mxu0 %v1056_v3  ;;  %v1070_v14 = vsub.f32 %v116_v0, %v1056_v3  ;;  %v1073_v15 = vsub.f32 %v115_v1, %v1058_v4  ;;  %v1076_v16 = vsub.f32 %v114_v2, %v1060_v5  ;;  %v1078_v17 = vand.u32 4294901760, %v110_v12  ;;  %318 = vmatpush.msra.mxu3 %v1056_v3  ;;  %v108_v21 = vld [vmem:[#allocation8 + $0x38] sm:$0xff]  ;;  %s1091_s16 = sld [smem:[#allocation3 + $0x2]]  ;;  %v107_v35 = vld [vmem:[#allocation8 + $0x30] sm:$0xff]  ;;  %v106_v36 = vld [vmem:[#allocation8 + $0x28] sm:$0xff]  ;;  %s849_s26 = sshll.u32 %s1006_s25, 4  ;;  %s850_s26 = int_to_ptr.vmem [resolvable:$true] %s849_s26 }
  0x19   :  { %v1084_v18 = vsub.f32 %v113_v6, %v1062_v9  ;;  %v1087_v19 = vsub.f32 %v112_v7, %v1064_v10  ;;  %v1089_v20 = vand.u32 4294901760, %v109_v13  ;;  %v1098_v25 = vsub.f32 %v111_v8, %v1066_v11  ;;  %s1101_s17 = sld [smem:[#allocation3 + $0x3]]  ;;  %v105_v42 = vld [vmem:[#allocation8 + $0x20] sm:$0xff]  ;;  %v104_v49 = vld [vmem:[#allocation8 + $0x18] sm:$0xff]  ;;  %v103_v56 = vld [vmem:[#allocation8 + $0x10] sm:$0xff]  ;;  %s851_s29 = sshll.u32 %s1545_s6, 4  ;;  %s852_s29 = int_to_ptr.hbm [resolvable:$true] %s851_s29 }
  0x1a   :  { %124 = vmatpush.msra.mxu0 %v1058_v4  ;;  %v164_v22 = vand.u32 4294901760, %v1070_v14  ;;  %v170_v23 = vand.u32 4294901760, %v1073_v15  ;;  %v176_v24 = vand.u32 4294901760, %v1076_v16  ;;  %265 = vmatpush.msra.mxu2 %v1070_v14  ;;  %v1106_v28 = vsub.f32 %v110_v12, %v1078_v17  ;;  %v102_v63 = vld [vmem:[#allocation8 + $0x8] sm:$0xff]  ;;  %v101_v12 = vld [vmem:[#allocation8] sm:$0xff] }
  0x1b   :  { %v182_v26 = vand.u32 4294901760, %v1084_v18  ;;  %v188_v27 = vand.u32 4294901760, %v1087_v19  ;;  %320 = vmatpush.msra.mxu3 %v1058_v4  ;;  %v1119_v32 = vand.u32 4294901760, %v108_v21  ;;  %v1126_v34 = vsub.f32 %v109_v13, %v1089_v20  ;;  %s85_s18 = scalar_lea.vmem [#allocation7], %s1054_s1 }
  0x1c   :  { %v165_v29 = vsub.f32 %v1070_v14, %v164_v22  ;;  %126 = vmatpush.msra.mxu0 %v1060_v5  ;;  %v171_v30 = vsub.f32 %v1073_v15, %v170_v23  ;;  %v177_v31 = vsub.f32 %v1076_v16, %v176_v24  ;;  %268 = vmatpush.msra.mxu2 %v1073_v15  ;;  %v194_v39 = vand.u32 4294901760, %v1098_v25  ;;  %v86_v50 = vld [vmem:[%s85_s18] sm:$0x1] }
  0x1d   :  { %v183_v33 = vsub.f32 %v1084_v18, %v182_v26  ;;  %322 = vmatpush.msra.mxu3 %v1060_v5  ;;  %v189_v40 = vsub.f32 %v1087_v19, %v188_v27  ;;  %v200_v41 = vand.u32 4294901760, %v1106_v28  ;;  %v1138_v44 = vand.u32 4294901760, %v107_v35  ;;  %87 = vst [vmem:[#allocation2] sm:$0x1] %v86_v50  ;;  %s89_s19 = scalar_lea.vmem [#allocation7], %s1081_s4  ;;  %v497_v14 = vld [vmem:[#allocation10 + $0x78] sm:$0xff] }
  0x1e   :  { %v166_v37 = vand.u32 4294901760, %v165_v29  ;;  %v172_v38 = vand.u32 4294901760, %v171_v30  ;;  %128 = vmatpush.msra.mxu0 %v1062_v9  ;;  %271 = vmatpush.msra.mxu2 %v1076_v16  ;;  %v178_v43 = vand.u32 4294901760, %v177_v31  ;;  %v1141_v45 = vsub.f32 %v108_v21, %v1119_v32  ;;  %v90_v54 = vld [vmem:[%s89_s19] sm:$0x1]  ;;  %s93_s20 = scalar_lea.vmem [#allocation7], %s1091_s16 }
  0x1f   :  { %324 = vmatpush.msra.mxu3 %v1062_v9  ;;  %v1143_v46 = vand.u32 4294901760, %v106_v36  ;;  %v184_v47 = vand.u32 4294901760, %v183_v33  ;;  %v206_v48 = vand.u32 4294901760, %v1126_v34  ;;  %v195_v51 = vsub.f32 %v1098_v25, %v194_v39  ;;  %v94_v57 = vld [vmem:[%s93_s20] sm:$0x1]  ;;  %s97_s21 = scalar_lea.vmem [#allocation7], %s1101_s17 }
  0x20   :  { %167 = vmatpush.msra.mxu1 %v166_v37  ;;  %130 = vmatpush.msra.mxu0 %v1064_v10  ;;  %v1154_v52 = vsub.f32 %v107_v35, %v1138_v44  ;;  %v1156_v53 = vand.u32 4294901760, %v105_v42  ;;  %v201_v55 = vsub.f32 %v1106_v28, %v200_v41  ;;  %v190_v58 = vand.u32 4294901760, %v189_v40  ;;  %91 = vst [vmem:[#allocation2 + $0x1] sm:$0x1] %v90_v54  ;;  %v98_v0 = vld [vmem:[%s97_s21] sm:$0x1] }
  0x21   :  { %274 = vmatpush.msra.mxu2 %v1084_v18  ;;  %326 = vmatpush.msra.mxu3 %v1064_v10  ;;  %v212_v59 = vand.u32 4294901760, %v1141_v45  ;;  %v1168_v60 = vsub.f32 %v106_v36, %v1143_v46  ;;  %v1170_v61 = vand.u32 4294901760, %v104_v49  ;;  %v207_v62 = vsub.f32 %v1126_v34, %v206_v48  ;;  %95 = vst [vmem:[#allocation2 + $0x2] sm:$0x1] %v94_v57 }
  0x22   :  { %173 = vmatpush.msra.mxu1 %v172_v38  ;;  %132 = vmatpush.msra.mxu0 %v1066_v11  ;;  %v196_v1 = vand.u32 4294901760, %v195_v51  ;;  %v218_v2 = vand.u32 4294901760, %v1154_v52  ;;  %v1181_v6 = vsub.f32 %v105_v42, %v1156_v53  ;;  %v1183_v7 = vand.u32 4294901760, %v103_v56  ;;  %99 = vst [vmem:[#allocation2 + $0x3] sm:$0x1] %v98_v0 }
  0x23   :  { %277 = vmatpush.msra.mxu2 %v1087_v19  ;;  %328 = vmatpush.msra.mxu3 %v1066_v11  ;;  %v202_v8 = vand.u32 4294901760, %v201_v55  ;;  %v213_v13 = vsub.f32 %v1141_v45, %v212_v59  ;;  %v224_v21 = vand.u32 4294901760, %v1168_v60  ;;  %v1193_v29 = vsub.f32 %v104_v49, %v1170_v61 }
  0x24   :  { %179 = vmatpush.msra.mxu1 %v178_v43  ;;  %134 = vmatpush.msra.mxu0 %v1078_v17  ;;  %v1195_v30 = vand.u32 4294901760, %v102_v63  ;;  %v208_v31 = vand.u32 4294901760, %v207_v62  ;;  %v219_v33 = vsub.f32 %v1154_v52, %v218_v2  ;;  %v230_v35 = vand.u32 4294901760, %v1181_v6 }
  0x25   :  { %280 = vmatpush.msra.mxu2 %v1098_v25  ;;  %330 = vmatpush.msra.mxu3 %v1078_v17  ;;  %v1205_v36 = vsub.f32 %v103_v56, %v1183_v7  ;;  %v1207_v37 = vand.u32 4294901760, %v101_v12  ;;  %v214_v38 = vand.u32 4294901760, %v213_v13  ;;  %v225_v40 = vsub.f32 %v1168_v60, %v224_v21 }
  0x26   :  { %185 = vmatpush.msra.mxu1 %v184_v47  ;;  %136 = vmatpush.msra.mxu0 %v1089_v20  ;;  %v236_v42 = vand.u32 4294901760, %v1193_v29  ;;  %v1217_v43 = vsub.f32 %v102_v63, %v1195_v30  ;;  %v220_v47 = vand.u32 4294901760, %v219_v33  ;;  %v231_v49 = vsub.f32 %v1181_v6, %v230_v35 }
  0x27   :  { %283 = vmatpush.msra.mxu2 %v1106_v28  ;;  %332 = vmatpush.msra.mxu3 %v1089_v20  ;;  %v242_v50 = vand.u32 4294901760, %v1205_v36  ;;  %v1227_v51 = vsub.f32 %v101_v12, %v1207_v37  ;;  %v226_v55 = vand.u32 4294901760, %v225_v40  ;;  %v1272_v15 = vand.u32 4294901760, %v497_v14 }
  0x28   :  { %191 = vmatpush.msra.mxu1 %v190_v58  ;;  %138 = vmatpush.msra.mxu0 %v1119_v32  ;;  %v237_v56 = vsub.f32 %v1193_v29, %v236_v42  ;;  %v248_v57 = vand.u32 4294901760, %v1217_v43  ;;  %v232_v62 = vand.u32 4294901760, %v231_v49 }
  0x29   :  { %286 = vmatpush.msra.mxu2 %v1126_v34  ;;  %334 = vmatpush.msra.mxu3 %v1119_v32  ;;  %v100_v54 = vld [vmem:[#allocation2] sm:$0xf]  ;;  %v243_v63 = vsub.f32 %v1205_v36, %v242_v50  ;;  %v254_v0 = vand.u32 4294901760, %v1227_v51 }
  0x2a   :  { %197 = vmatpush.msra.mxu1 %v196_v1  ;;  %140 = vmatpush.msra.mxu0 %v1138_v44  ;;  %v1236_v58 = vand.u32 4294901760, %v100_v54  ;;  %v249_v12 = vsub.f32 %v1217_v43, %v248_v57 }
  0x2b   :  { %289 = vmatpush.msra.mxu2 %v1141_v45  ;;  %336 = vmatpush.msra.mxu3 %v1138_v44  ;;  %v255_v33 = vsub.f32 %v1227_v51, %v254_v0 }
  0x2c   :  { %203 = vmatpush.msra.mxu1 %v202_v8  ;;  %142 = vmatpush.msra.mxu0 %v1143_v46  ;;  %v154_v1 = vsub.f32 %v100_v54, %v1236_v58  ;;  %v238_v8 = vand.u32 4294901760, %v237_v56  ;;  %v250_v40 = vand.u32 4294901760, %v249_v12  ;;  %v495_v54 = vld [vmem:[#allocation10 + $0x68] sm:$0xff] }
  0x2d   :  { %292 = vmatpush.msra.mxu2 %v1154_v52  ;;  %338 = vmatpush.msra.mxu3 %v1143_v46  ;;  %v256_v49 = vand.u32 4294901760, %v255_v33  ;;  %v1276_v16 = vand.u32 4294901760, %v495_v54  ;;  %v487_v12 = vld [vmem:[#allocation10 + $0x28] sm:$0xff]  ;;  %v486_v33 = vld [vmem:[#allocation10 + $0x20] sm:$0xff] }
  0x2e   :  { %209 = vmatpush.msra.mxu1 %v208_v31  ;;  %144 = vmatpush.msra.mxu0 %v1156_v53  ;;  %v155_v13 = vand.u32 4294901760, %v154_v1  ;;  %v244_v31 = vand.u32 4294901760, %v243_v63 }
  0x2f   :  { %295 = vmatpush.msra.mxu2 %v1168_v60  ;;  %340 = vmatpush.msra.mxu3 %v1156_v53 }
  0x30   :  { %215 = vmatpush.msra.mxu1 %v214_v38  ;;  %146 = vmatpush.msra.mxu0 %v1170_v61  ;;  %v156_v38 = vsub.f32 %v154_v1, %v155_v13 }
  0x31   :  { %298 = vmatpush.msra.mxu2 %v1181_v6  ;;  %342 = vmatpush.msra.mxu3 %v1170_v61 }
  0x32   :  { %221 = vmatpush.msra.mxu1 %v220_v47  ;;  %148 = vmatpush.msra.mxu0 %v1183_v7  ;;  %v157_v47 = vand.u32 4294901760, %v156_v38 }
  0x33   :  { %301 = vmatpush.msra.mxu2 %v1193_v29  ;;  %344 = vmatpush.msra.mxu3 %v1183_v7 }
  0x34   :  { %227 = vmatpush.msra.mxu1 %v226_v55  ;;  %150 = vmatpush.msra.mxu0 %v1195_v30  ;;  %v493_v55 = vld [vmem:[#allocation10 + $0x58] sm:$0xff] }
  0x35   :  { %304 = vmatpush.msra.mxu2 %v1205_v36  ;;  %346 = vmatpush.msra.mxu3 %v1195_v30 }
  0x36   :  { %233 = vmatpush.msra.mxu1 %v232_v62  ;;  %152 = vmatpush.msra.mxu0 %v1207_v37 }
  0x37   :  { %307 = vmatpush.msra.mxu2 %v1217_v43  ;;  %348 = vmatpush.msra.mxu3 %v1207_v37 }
  0x38   :  { %359 = vmatpush.msrb.mxu0 %v164_v22  ;;  %239 = vmatpush.msra.mxu1 %v238_v8  ;;  %v496_v22 = vld [vmem:[#allocation10 + $0x70] sm:$0xff] }
  0x39   :  { %310 = vmatpush.msra.mxu2 %v1227_v51  ;;  %352 = vmatmul.f32.vlgmr.msra.gmra.mxu3 %v155_v13 }
  0x3a   :  { %363 = vmatpush.msrb.mxu0 %v170_v23  ;;  %245 = vmatpush.msra.mxu1 %v244_v31  ;;  %v1274_v23 = vand.u32 4294901760, %v496_v22  ;;  %v1425_v31 = vand.u32 4294901760, %v487_v12 }
  0x3b   :  { %313 = vmatmul.f32.vlgmr.msra.gmra.mxu2 %v154_v1  ;;  %158 = vmatmul.f32.vlgmr.msra.gmra.mxu0 %v157_v47  ;;  %v1433_v47 = vand.u32 4294901760, %v486_v33 }
  0x3c   :  { %367 = vmatpush.msrb.mxu0 %v176_v24  ;;  %251 = vmatpush.msra.mxu1 %v250_v40  ;;  %v494_v24 = vld [vmem:[#allocation10 + $0x60] sm:$0xff]  ;;  %v1290_v19 = vsub.f32 %v496_v22, %v1274_v23  ;;  %v1431_v40 = vsub.f32 %v487_v12, %v1425_v31 }
  0x3d   :  { %v1279_v18 = vand.u32 4294901760, %v494_v24  ;;  %503 = vmatpush.msrb.mxu2 %v1272_v15 }
  0x3e   :  { %371 = vmatpush.msrb.mxu0 %v182_v26  ;;  %257 = vmatpush.msra.mxu1 %v256_v49  ;;  %v1281_v26 = vand.u32 4294901760, %v493_v55  ;;  %v551_v25 = vand.u32 4294901760, %v1290_v19  ;;  %v485_v49 = vld [vmem:[#allocation10 + $0x18] sm:$0xff]  ;;  %v605_v22 = vand.u32 4294901760, %v1431_v40 }
  0x3f   :  { %259 = vmatmul.f32.vlgmr.msra.gmra.mxu1 %v1236_v58  ;;  %v1296_v56 = vsub.f32 %v494_v24, %v1279_v18  ;;  %505 = vmatpush.msrb.mxu2 %v1274_v23  ;;  %v1445_v24 = vand.u32 4294901760, %v485_v49 }
  0x40   :  { %426 = vmatpush.msrb.mxu1 %v1056_v3  ;;  %375 = vmatpush.msrb.mxu0 %v188_v27  ;;  %v1287_v3 = vsub.f32 %v497_v14, %v1272_v15  ;;  %v1293_v27 = vsub.f32 %v495_v54, %v1276_v16  ;;  %v1300_v62 = vsub.f32 %v493_v55, %v1281_v26  ;;  %v484_v55 = vld [vmem:[#allocation10 + $0x10] sm:$0xff] }
  0x41   :  { %v563_v63 = vand.u32 4294901760, %v1296_v56  ;;  %v552_v28 = vsub.f32 %v1290_v19, %v551_v25  ;;  %507 = vmatpush.msrb.mxu2 %v1276_v16  ;;  %v1443_v54 = vsub.f32 %v486_v33, %v1433_v47 }
  0x42   :  { %428 = vmatpush.msrb.mxu1 %v1058_v4  ;;  %379 = vmatpush.msrb.mxu0 %v194_v39  ;;  %v545_v4 = vand.u32 4294901760, %v1287_v3  ;;  %v557_v39 = vand.u32 4294901760, %v1293_v27  ;;  %v569_v1 = vand.u32 4294901760, %v1300_v62 }
  0x43   :  { %v553_v34 = vand.u32 4294901760, %v552_v28  ;;  %509 = vmatpush.msrb.mxu2 %v1279_v18  ;;  %v606_v28 = vsub.f32 %v1431_v40, %v605_v22 }
  0x44   :  { %430 = vmatpush.msrb.mxu1 %v1060_v5  ;;  %383 = vmatpush.msrb.mxu0 %v200_v41  ;;  %v546_v5 = vsub.f32 %v1287_v3, %v545_v4  ;;  %v558_v41 = vsub.f32 %v1293_v27, %v557_v39 }
  0x45   :  { %511 = vmatpush.msrb.mxu2 %v1281_v26 }
  0x46   :  { %432 = vmatpush.msrb.mxu1 %v1062_v9  ;;  %387 = vmatpush.msrb.mxu0 %v206_v48  ;;  %v547_v9 = vand.u32 4294901760, %v546_v5  ;;  %v564_v48 = vsub.f32 %v1296_v56, %v563_v63  ;;  %v559_v8 = vand.u32 4294901760, %v558_v41  ;;  %v611_v41 = vand.u32 4294901760, %v1443_v54 }
  0x48   :  { %434 = vmatpush.msrb.mxu1 %v1064_v10  ;;  %391 = vmatpush.msrb.mxu0 %v212_v59  ;;  %v570_v10 = vsub.f32 %v1300_v62, %v569_v1  ;;  %v565_v45 = vand.u32 4294901760, %v564_v48  ;;  %v483_v48 = vld [vmem:[#allocation10 + $0x8] sm:$0xff] }
  0x49   :  { %548 = vmatpush.msrb.mxu3 %v547_v9  ;;  %v1455_v9 = vsub.f32 %v485_v49, %v1445_v24 }
  0x4a   :  { %436 = vmatpush.msrb.mxu1 %v1066_v11  ;;  %395 = vmatpush.msrb.mxu0 %v218_v2  ;;  %v571_v11 = vand.u32 4294901760, %v570_v10  ;;  %v489_v2 = vld [vmem:[#allocation10 + $0x38] sm:$0xff]  ;;  %v612_v10 = vsub.f32 %v1443_v54, %v611_v41 }
  0x4b   :  { %554 = vmatpush.msrb.mxu3 %v553_v34  ;;  %v1397_v29 = vand.u32 4294901760, %v489_v2  ;;  %v1459_v34 = vand.u32 4294901760, %v484_v55 }
  0x4c   :  { %438 = vmatpush.msrb.mxu1 %v1078_v17  ;;  %399 = vmatpush.msrb.mxu0 %v224_v21  ;;  %v492_v17 = vld [vmem:[#allocation10 + $0x50] sm:$0xff] }
  0x4d   :  { %560 = vmatpush.msrb.mxu3 %v559_v8  ;;  %v1407_v36 = vsub.f32 %v489_v2, %v1397_v29  ;;  %v607_v8 = vand.u32 4294901760, %v606_v28 }
  0x4e   :  { %440 = vmatpush.msrb.mxu1 %v1089_v20  ;;  %403 = vmatpush.msrb.mxu0 %v230_v35  ;;  %v1372_v20 = vand.u32 4294901760, %v492_v17 }
  0x4f   :  { %566 = vmatpush.msrb.mxu3 %v565_v45  ;;  %v593_v43 = vand.u32 4294901760, %v1407_v36  ;;  %v617_v45 = vand.u32 4294901760, %v1455_v9 }
  0x50   :  { %442 = vmatpush.msrb.mxu1 %v1119_v32  ;;  %407 = vmatpush.msrb.mxu0 %v236_v42  ;;  %v1375_v32 = vsub.f32 %v492_v17, %v1372_v20  ;;  %v1470_v17 = vand.u32 4294901760, %v483_v48 }
  0x51   :  { %572 = vmatpush.msrb.mxu3 %v571_v11  ;;  %513 = vmatpush.msrb.mxu2 %v1372_v20  ;;  %v594_v51 = vsub.f32 %v1407_v36, %v593_v43  ;;  %v1468_v11 = vsub.f32 %v484_v55, %v1459_v34 }
  0x52   :  { %444 = vmatpush.msrb.mxu1 %v1138_v44  ;;  %411 = vmatpush.msrb.mxu0 %v242_v50  ;;  %v491_v44 = vld [vmem:[#allocation10 + $0x48] sm:$0xff] }
  0x53   :  { %v1380_v52 = vand.u32 4294901760, %v491_v44 }
  0x54   :  { %446 = vmatpush.msrb.mxu1 %v1143_v46  ;;  %415 = vmatpush.msrb.mxu0 %v248_v57  ;;  %v575_v46 = vand.u32 4294901760, %v1375_v32  ;;  %v595_v57 = vand.u32 4294901760, %v594_v51 }
  0x55   :  { %v1387_v60 = vsub.f32 %v491_v44, %v1380_v52  ;;  %515 = vmatpush.msrb.mxu2 %v1380_v52  ;;  %v482_v44 = vld [vmem:[#allocation10] sm:$0xff] }
  0x56   :  { %448 = vmatpush.msrb.mxu1 %v1156_v53  ;;  %419 = vmatpush.msrb.mxu0 %v254_v0  ;;  %v490_v53 = vld [vmem:[#allocation10 + $0x40] sm:$0xff]  ;;  %v576_v59 = vsub.f32 %v1375_v32, %v575_v46  ;;  %v1477_v2 = vand.u32 4294901760, %v482_v44 }
  0x57   :  { %421 = vmatmul.f32.vlgmr.msrb.gmra.mxu0 %v1236_v58 }
  0x58   :  { %450 = vmatpush.msrb.mxu1 %v1170_v61  ;;  %646 = vmatpush.msra.mxu0 %v1287_v3  ;;  %v1389_v61 = vand.u32 4294901760, %v490_v53  ;;  %v577_v6 = vand.u32 4294901760, %v576_v59  ;;  %v618_v59 = vsub.f32 %v1455_v9, %v617_v45 }
  0x5a   :  { %452 = vmatpush.msrb.mxu1 %v1183_v7  ;;  %649 = vmatpush.msra.mxu0 %v1290_v19  ;;  %v581_v7 = vand.u32 4294901760, %v1387_v60  ;;  %v1395_v21 = vsub.f32 %v490_v53, %v1389_v61  ;;  %v613_v53 = vand.u32 4294901760, %v612_v10 }
  0x5b   :  { %517 = vmatpush.msrb.mxu2 %v1389_v61  ;;  %578 = vmatpush.msrb.mxu3 %v577_v6  ;;  %v623_v6 = vand.u32 4294901760, %v1468_v11 }
  0x5c   :  { %454 = vmatpush.msrb.mxu1 %v1195_v30  ;;  %652 = vmatpush.msra.mxu0 %v1293_v27  ;;  %v582_v30 = vsub.f32 %v1387_v60, %v581_v7  ;;  %v587_v35 = vand.u32 4294901760, %v1395_v21 }
  0x5d   :  { %519 = vmatpush.msrb.mxu2 %v1397_v29 }
  0x5e   :  { %456 = vmatpush.msrb.mxu1 %v1207_v37  ;;  %655 = vmatpush.msra.mxu0 %v1296_v56  ;;  %v583_v37 = vand.u32 4294901760, %v582_v30  ;;  %v588_v42 = vsub.f32 %v1395_v21, %v587_v35  ;;  %v628_v30 = vsub.f32 %v483_v48, %v1470_v17 }
  0x5f   :  { %458 = vmatmul.f32.vlgmr.msrb.gmra.mxu1 %v1236_v58  ;;  %v488_v58 = vld [vmem:[#allocation10 + $0x30] sm:$0xff] }
  0x60   :  { %699 = vmatpush.msra.mxu1 %v1272_v15  ;;  %658 = vmatpush.msra.mxu0 %v1300_v62  ;;  %v589_v50 = vand.u32 4294901760, %v588_v42  ;;  %v1420_v0 = vand.u32 4294901760, %v488_v58  ;;  %v634_v42 = vsub.f32 %v482_v44, %v1477_v2  ;;  %v629_v51 = vand.u32 4294901760, %v628_v30 }
  0x61   :  { %584 = vmatpush.msrb.mxu3 %v583_v37  ;;  %v619_v37 = vand.u32 4294901760, %v618_v59 }
  0x62   :  { %701 = vmatpush.msra.mxu1 %v1274_v23  ;;  %661 = vmatpush.msra.mxu0 %v1375_v32  ;;  %v1423_v13 = vsub.f32 %v488_v58, %v1420_v0  ;;  %v630_v12 = vsub.f32 %v628_v30, %v629_v51 }
  0x63   :  { %590 = vmatpush.msrb.mxu3 %v589_v50  ;;  %521 = vmatpush.msrb.mxu2 %v1420_v0  ;;  %v624_v50 = vsub.f32 %v1468_v11, %v623_v6 }
  0x64   :  { %703 = vmatpush.msra.mxu1 %v1276_v16  ;;  %664 = vmatpush.msra.mxu0 %v1387_v60  ;;  %v599_v38 = vand.u32 4294901760, %v1423_v13  ;;  %v631_v49 = vand.u32 4294901760, %v630_v12 }
  0x65   :  { %596 = vmatpush.msrb.mxu3 %v595_v57  ;;  %523 = vmatpush.msrb.mxu2 %v1425_v31  ;;  %v635_v57 = vand.u32 4294901760, %v634_v42  ;;  %v625_v58 = vand.u32 4294901760, %v624_v50 }
  0x66   :  { %705 = vmatpush.msra.mxu1 %v1279_v18  ;;  %667 = vmatpush.msra.mxu0 %v1395_v21  ;;  %v600_v14 = vsub.f32 %v1423_v13, %v599_v38 }
  0x67   :  { %525 = vmatpush.msrb.mxu2 %v1433_v47  ;;  %v636_v33 = vsub.f32 %v634_v42, %v635_v57 }
  0x68   :  { %707 = vmatpush.msra.mxu1 %v1281_v26  ;;  %670 = vmatpush.msra.mxu0 %v1407_v36  ;;  %v601_v5 = vand.u32 4294901760, %v600_v14  ;;  %v878_v14 = vld [vmem:[%s1542_s3] ss:$0 sm:$0xff] }
  0x69   :  { %527 = vmatpush.msrb.mxu2 %v1445_v24  ;;  %v637_v55 = vand.u32 4294901760, %v636_v33 }
  0x6a   :  { %709 = vmatpush.msra.mxu1 %v1372_v20  ;;  %673 = vmatpush.msra.mxu0 %v1423_v13 }
  0x6b   :  { %602 = vmatpush.msrb.mxu3 %v601_v5  ;;  %529 = vmatpush.msrb.mxu2 %v1459_v34 }
  0x6c   :  { %711 = vmatpush.msra.mxu1 %v1380_v52  ;;  %676 = vmatpush.msra.mxu0 %v1431_v40  ;;  %v879_v40 = vld [vmem:[%s1544_s5] ss:$0 sm:$0xff] }
  0x6d   :  { %608 = vmatpush.msrb.mxu3 %v607_v8  ;;  %531 = vmatpush.msrb.mxu2 %v1470_v17 }
  0x6e   :  { %713 = vmatpush.msra.mxu1 %v1389_v61  ;;  %679 = vmatpush.msra.mxu0 %v1443_v54 }
  0x6f   :  { %614 = vmatpush.msrb.mxu3 %v613_v53  ;;  %533 = vmatpush.msrb.mxu2 %v1477_v2 }
  0x70   :  { %715 = vmatpush.msra.mxu1 %v1397_v29  ;;  %682 = vmatpush.msra.mxu0 %v1455_v9 }
  0x71   :  { %620 = vmatpush.msrb.mxu3 %v619_v37  ;;  %740 = vmatpush.msra.mxu2 %v545_v4 }
  0x72   :  { %717 = vmatpush.msra.mxu1 %v1420_v0  ;;  %685 = vmatpush.msra.mxu0 %v1468_v11 }
  0x73   :  { %744 = vmatpush.msra.mxu2 %v551_v25  ;;  %626 = vmatpush.msrb.mxu3 %v625_v58 }
  0x74   :  { %719 = vmatpush.msra.mxu1 %v1425_v31  ;;  %688 = vmatpush.msra.mxu0 %v628_v30 }
  0x75   :  { %748 = vmatpush.msra.mxu2 %v557_v39  ;;  %632 = vmatpush.msrb.mxu3 %v631_v49 }
  0x76   :  { %721 = vmatpush.msra.mxu1 %v1433_v47  ;;  %691 = vmatpush.msra.mxu0 %v634_v42 }
  0x77   :  { %752 = vmatpush.msra.mxu2 %v563_v63  ;;  %638 = vmatpush.msrb.mxu3 %v637_v55 }
  0x78   :  { %723 = vmatpush.msra.mxu1 %v1445_v24 }
  0x79   :  { %807 = vmatpush.msra.mxu3 %v1272_v15  ;;  %756 = vmatpush.msra.mxu2 %v569_v1 }
  0x7a   :  { %725 = vmatpush.msra.mxu1 %v1459_v34 }
  0x7b   :  { %809 = vmatpush.msra.mxu3 %v1274_v23  ;;  %760 = vmatpush.msra.mxu2 %v575_v46 }
  0x7c   :  { %727 = vmatpush.msra.mxu1 %v1470_v17 }
  0x7d   :  { %811 = vmatpush.msra.mxu3 %v1276_v16  ;;  %764 = vmatpush.msra.mxu2 %v581_v7 }
  0x7e   :  { %729 = vmatpush.msra.mxu1 %v1477_v2 }
  0x7f   :  { %813 = vmatpush.msra.mxu3 %v1279_v18  ;;  %768 = vmatpush.msra.mxu2 %v587_v35 }
  0x81   :  { %815 = vmatpush.msra.mxu3 %v1281_v26  ;;  %772 = vmatpush.msra.mxu2 %v593_v43 }
  0x83   :  { %817 = vmatpush.msra.mxu3 %v1372_v20  ;;  %776 = vmatpush.msra.mxu2 %v599_v38 }
  0x85   :  { %819 = vmatpush.msra.mxu3 %v1380_v52  ;;  %780 = vmatpush.msra.mxu2 %v605_v22 }
  0x87   :  { %821 = vmatpush.msra.mxu3 %v1389_v61  ;;  %784 = vmatpush.msra.mxu2 %v611_v41 }
  0x89   :  { %823 = vmatpush.msra.mxu3 %v1397_v29  ;;  %788 = vmatpush.msra.mxu2 %v617_v45 }
  0x8b   :  { %825 = vmatpush.msra.mxu3 %v1420_v0  ;;  %792 = vmatpush.msra.mxu2 %v623_v6 }
  0x8d   :  { %827 = vmatpush.msra.mxu3 %v1425_v31  ;;  %796 = vmatpush.msra.mxu2 %v629_v51 }
  0x8f   :  { %829 = vmatpush.msra.mxu3 %v1433_v47  ;;  %800 = vmatpush.msra.mxu2 %v635_v57 }
  0x91   :  { %831 = vmatpush.msra.mxu3 %v1445_v24 }
  0x93   :  { %833 = vmatpush.msra.mxu3 %v1459_v34 }
  0x95   :  { %835 = vmatpush.msra.mxu3 %v1470_v17 }
  0x97   :  { %837 = vmatpush.msra.mxu3 %v1477_v2 }
  0xb8   :  { %v159_v3 = vpop.f32.mrf.mxu0 }
  0xb9   :  { %v160_v4 = vadd.f32 %v878_v14, %v159_v3 }
  0xbc   :  { %v260_v19 = vpop.f32.mrf.mxu1  ;;  %v353_v23 = vpop.f32.mrf.mxu3 }
  0xbd   :  { %v261_v27 = vadd.f32 %v260_v19, %v160_v4 }
  0xbe   :  { %v314_v56 = vpop.f32.mrf.mxu2 }
  0xbf   :  { %v315_v15 = vadd.f32 %v314_v56, %v261_v27 }
  0xc1   :  { %v354_v16 = vadd.f32 %v353_v23, %v315_v15 }
  0xd4   :  { %v422_v18 = vpop.f32.mrf.mxu0 }
  0xd5   :  { %v423_v26 = vadd.f32 %v422_v18, %v354_v16 }
  0xdc   :  { %v459_v62 = vpop.f32.mrf.mxu1 }
  0xdd   :  { %v460_v25 = vadd.f32 %v459_v62, %v423_v26 }
  0xdf   :  { %v870_v39 = vmul.f32 -1.442695, %v460_v25 }
  0xe1   :  { %880 = vpow2.f32 %v870_v39 }
  0xe7   :  { %v881_v63 = vpop.eup %880 }
  0xe8   :  { %v465_v1 = vadd.f32 1.0, %v881_v63 }
  0xea   :  { %882 = vrcp.f32 %v465_v1  ;;  %v477_v52 = vand.u32 2147483648, %v465_v1  ;;  %v475_v61 = vand.u32 2147483647, %v465_v1  ;;  %vm471_vm1 = vweird.f32 %v465_v1 }
  0xec   :  { %v478_v21 = vor.u32 1.1754944e-38, %v477_v52  ;;  %vm476_vm3 = vcmp.eq.f32.partialorder %v475_v61, 8.507059e+37 }
  0xf0   :  { %v883_v20 = vpop.eup %882 }
  0xf1   :  { %v467_v32 = vmul.f32 %v883_v20, %v465_v1  ;;  %vm472_vm0 = vweird.f32 %v883_v20 }
  0xf2   :  { %vm473_vm2 = vmor %vm471_vm1, %vm472_vm0 }
  0xf3   :  { %v468_v46 = vsub.f32 1.0, %v467_v32 }
  0xf5   :  { %v469_v60 = vmul.f32 %v883_v20, %v468_v46 }
  0xf7   :  { %v470_v7 = vadd.f32 %v883_v20, %v469_v60 }
  0xf9   :  { %v474_v29 = vsel %vm473_vm2, %v883_v20, %v470_v7 }
  0xfa   :  { %v479_v35 = vsel %vm476_vm3, %v478_v21, %v474_v29 }
  0xfb   :  { %v481_v36 = vmul.f32 %v479_v35, %v460_v25 }
  0xfd   :  { %v534_v43 = vand.u32 4294901760, %v481_v36 }
  0xff   :  { %v535_v0 = vsub.f32 %v481_v36, %v534_v43  ;;  %640 = vmatmul.f32.vlgmr.msrb.gmra.mxu3 %v534_v43 }
 0x101   :  { %694 = vmatmul.f32.vlgmr.msra.gmra.mxu0 %v535_v0  ;;  %v536_v13 = vand.u32 4294901760, %v535_v0 }
 0x103   :  { %733 = vmatmul.f32.vlgmr.msra.gmra.mxu1 %v536_v13  ;;  %v537_v31 = vsub.f32 %v535_v0, %v536_v13 }
 0x105   :  { %v538_v38 = vand.u32 4294901760, %v537_v31 }
 0x107   :  { %539 = vmatmul.f32.vlgmr.msrb.gmra.mxu2 %v538_v38  ;;  %839 = vmatmul.f32.vlgmr.msra.gmra.mxu3 %v534_v43 }
 0x10f   :  { %802 = vmatmul.f32.vlgmr.msra.gmra.mxu2 %v534_v43 }
 0x17e   :  { %v695_v5 = vpop.f32.mrf.mxu0 }
 0x180   :  { %v734_v41 = vpop.f32.mrf.mxu1 }
 0x182   :  { %v641_v47 = vpop.f32.mrf.mxu3 }
 0x18a   :  { %v540_v22 = vpop.f32.mrf.mxu2  ;;  %v840_v8 = vpop.f32.mrf.mxu3 }
 0x18b   :  { %v541_v54 = vadd.f32 %v879_v40, %v540_v22 }
 0x18d   :  { %v642_v24 = vadd.f32 %v641_v47, %v541_v54 }
 0x18f   :  { %v696_v28 = vadd.f32 %v695_v5, %v642_v24 }
 0x191   :  { %v735_v9 = vadd.f32 %v734_v41, %v696_v28 }
 0x192   :  { %v803_v34 = vpop.f32.mrf.mxu2 }
 0x193   :  { %v804_v48 = vadd.f32 %v803_v34, %v735_v9 }
 0x195   :  { %v841_v10 = vadd.f32 %v840_v8, %v804_v48 }
 0x197   :  { %843 = vst [vmem:[#allocation11] sm:$0xf] %v841_v10 }
 0x198   :  { %854 = dma.vmem_to_hbm [thread:$0]  %s850_s26, 64, %s852_s29, [#allocation5]  }
 0x199   :  { %998 = dma.done.wait [#allocation5], 64  }
 0x19a   :  { %999 = vsyncadd [#allocation5], 4294967232 }
 0x19b   :  { %859 = vsyncpa [#allocation4], 1 }
 0x19c   :  { %860 = vsyncpa [#allocation9], 1 }
 0x19d   :  { %861 = vsyncpa [#allocation5], 1 }
 0x19e   :  { %862 = vsyncpa [#allocation6], 1 }

</bundles_post_ra>
